<compile_context>
chip_gen: v5e
topology: v5e:2x2
jax: 0.10.0
libtpu: 0.0.40
codegen_flags: <defaults>
</compile_context>

<pallas_src>
import jax
import jax.numpy as jnp
import numpy as np
from jax.experimental import pallas as pl
from jax.experimental.pallas import tpu as pltpu


def _dropout1d_kernel(x_ref, f_ref, o_ref):
    # x_ref: (TR, TL) tile of the collapsed (N*C, L) input.
    # f_ref: (TR, 1) per-row factor (0.0 or 1/(1-p)), already in x's dtype.
    # Single fused broadcast-multiply; keeps vld/vst as the binding resource.
    o_ref[...] = x_ref[...] * f_ref[...]


def dropout1d(x, p, seed, training=True):
    """Channel-wise dropout (PyTorch Dropout2d semantics) on an (N, C, L) array."""
    p = float(p)
    if not (0.0 <= p <= 1.0):
        raise ValueError(f"dropout probability must be in [0, 1], got {p}")
    if not training or p == 0.0:
        return x
    if p == 1.0:
        return jnp.zeros_like(x)

    N, C, L = x.shape
    R = N * C
    x2 = x.reshape(R, L)

    # Per-(n, c) keep/scale factor, computed once in the wrapper (tiny pre-pass).
    key = jax.random.PRNGKey(seed)
    u = jax.random.uniform(key, (R, 1), dtype=jnp.float32)
    scale = 1.0 / (1.0 - p)
    factor = jnp.where(u >= p, jnp.float32(scale), jnp.float32(0.0)).astype(x.dtype)

    # Tile sizes: biggest bounded tiles that stay VMEM-friendly on all generations
    # (512 x 1024 f32 = 2 MiB per buffer; fine under v7x's 64 MiB with double
    # buffering).  Block dims are either the full array dim or (8, 128)-aligned.
    TR = R if R <= 512 else 512
    TL = L if L <= 1024 else 1024
    grid = (pl.cdiv(R, TR), pl.cdiv(L, TL))

    # TODO(synk): for very small L (< 128 lanes) the output stores are masked
    # (vst.msk); a lane-folding reshape could recover full lane density but is
    # not worth the mask-replication cost here.
    out = pl.pallas_call(
        _dropout1d_kernel,
        out_shape=jax.ShapeDtypeStruct((R, L), x.dtype),
        grid_spec=pl.GridSpec(
            grid=grid,
            in_specs=[
                pl.BlockSpec((TR, TL), lambda i, j: (i, j)),
                pl.BlockSpec((TR, 1), lambda i, j: (i, 0)),
            ],
            out_specs=pl.BlockSpec((TR, TL), lambda i, j: (i, j)),
        ),
        compiler_params=pltpu.CompilerParams(
            dimension_semantics=("parallel", "parallel")),
    )(x2, factor)
    return out.reshape(N, C, L)


def _check_channelwise(xn, yn, p):
    """Every (n, c) row must be all-zero or exactly x * 1/(1-p)."""
    scale = 1.0 / (1.0 - p)
    N, C, L = xn.shape
    x2 = xn.reshape(N * C, L)
    y2 = yn.reshape(N * C, L)
    is_zero = np.all(np.isclose(y2, 0.0, atol=1e-6), axis=-1)
    is_scaled = np.all(np.isclose(y2, x2 * scale, rtol=1e-5, atol=1e-5), axis=-1)
    assert np.all(is_zero | is_scaled), "channel neither dropped nor correctly scaled"


if __name__ == "__main__":
    key = jax.random.PRNGKey(0)
    p = 0.5

    # Small shape consistent with the module's (N, C, L) forward.
    N, C, L = 2, 4, 16
    x = jax.random.normal(key, (N, C, L), dtype=jnp.float32)
    y = jax.block_until_ready(dropout1d(x, p=p, seed=1234, training=True))
    _check_channelwise(np.asarray(x), np.asarray(y), p)

    # Eval mode is the identity.
    y_eval = jax.block_until_ready(dropout1d(x, p=p, seed=1234, training=False))
    assert np.allclose(np.asarray(y_eval), np.asarray(x))

    # Slightly larger shape to exercise the multi-block / partial-block grid path.
    N2, C2, L2 = 4, 160, 384  # R = 640 > TR=512 -> 2 row blocks (one partial)
    x2 = jax.random.normal(jax.random.PRNGKey(1), (N2, C2, L2), dtype=jnp.float32)
    y2 = jax.block_until_ready(dropout1d(x2, p=p, seed=99, training=True))
    _check_channelwise(np.asarray(x2), np.asarray(y2), p)

    print("KERNEL_OK")
</pallas_src>

<mosaic_0001>
module attributes {stable_mosaic.version = 11 : i64} {
  func.func @_dropout1d_kernel(%arg0: i32, %arg1: i32, %arg2: memref<8x16xf32, #tpu.memory_space<vmem>>, %arg3: memref<8x1xf32, #tpu.memory_space<vmem>>, %arg4: memref<8x16xf32, #tpu.memory_space<vmem>>) attributes {dimension_semantics = [#tpu.dimension_semantics<parallel>, #tpu.dimension_semantics<parallel>], iteration_bounds = array<i64: 1, 1>, scalar_prefetch = 0 : i64, scratch_operands = 0 : i64, tpu.core_type = #tpu.core_type<tc>, window_params = [{transform_indices = @transform_0, window_bounds = array<i64: 8, 16>}, {transform_indices = @transform_1, window_bounds = array<i64: 8, 1>}, {transform_indices = @transform_2, window_bounds = array<i64: 8, 16>}]} {
    %c0 = arith.constant 0 : index
    %c0_0 = arith.constant 0 : index
    %0 = vector.load %arg2[%c0, %c0_0] : memref<8x16xf32, #tpu.memory_space<vmem>>, vector<8x16xf32>
    %c0_1 = arith.constant 0 : index
    %c0_2 = arith.constant 0 : index
    %1 = vector.load %arg3[%c0_1, %c0_2] : memref<8x1xf32, #tpu.memory_space<vmem>>, vector<8x1xf32>
    %2 = vector.broadcast %1 : vector<8x1xf32> to vector<8x16xf32>
    %3 = arith.mulf %0, %2 : vector<8x16xf32>
    %c0_3 = arith.constant 0 : index
    %c0_4 = arith.constant 0 : index
    %4 = vector.load %arg4[%c0_3, %c0_4] : memref<8x16xf32, #tpu.memory_space<vmem>>, vector<8x16xf32>
    tpu.vector_store %arg4[%c0_3, %c0_4], %3 {strides = array<i32>} : memref<8x16xf32, #tpu.memory_space<vmem>>, vector<8x16xf32>,
    return
  }
  func.func @transform_0(%arg0: i32, %arg1: i32) -> (i32, i32) {
    %c0_i32 = arith.constant 0 : i32
    return %arg0, %arg1 : i32, i32
  }
  func.func @transform_1(%arg0: i32, %arg1: i32) -> (i32, i32) {
    %c0_i32 = arith.constant 0 : i32
    %c0_i32_0 = arith.constant 0 : i32
    return %arg0, %c0_i32 : i32, i32
  }
  func.func @transform_2(%arg0: i32, %arg1: i32) -> (i32, i32) {
    %c0_i32 = arith.constant 0 : i32
    return %arg0, %arg1 : i32, i32
  }
}

</mosaic_0001>

<bundles_post_ra>
// kernel: tpu_custom_call.1
= control target key start
LH: loop header
LB: loop body
LE: loop exit
PB: predicated region body
PF: predicated region fallthrough
CT: control target
= control target key end

     0   :  { %s93_s0 = inlined_call_operand.vmem [shape: f32[8,16], index: 0, kind: input, shape index: {}]   ;;  %s94_s1 = inlined_call_operand.vmem [shape: f32[8,1], index: 1, kind: input, shape index: {}]   ;;  %s95_s2 = inlined_call_operand.hbm [shape: f32[8,16], index: 2, kind: output, shape index: {}]  }
   0x1   :  { %v13_v0 = vld [vmem:[%s94_s1] sm:$0xff] }
   0x2   :  { %7 = vsyncpa [#allocation3], 0  ;;  %v67_v1 = vmov 0   ;;  %v12_v2 = vld [vmem:[%s93_s0] sm:$0xff]  ;;  %s68_s13 = smov [#allocation2]   ;;  %s29_s17 = sshll.u32 %s95_s2, 4  ;;  %s30_s17 = int_to_ptr.hbm [resolvable:$true] %s29_s17 }
   0x3   :  { %40 = vset.pattern.permute.xlu0 %v67_v1  ;;  %s27_s14 = sshll.u32 %s68_s13, 4  ;;  %vm20_vm0 = vcmask 130048   ;;  %s28_s14 = int_to_ptr.vmem [resolvable:$true] %s27_s14 }
   0x4   :  { %16 = vperm.xlu0 %40, %v13_v0  }
  0x76   :  { %v17_v3 = vpop.permute.xlu0 %16 }
  0x77   :  { %v19_v4 = vmul.f32 %v17_v3, %v12_v2 }
  0x79   :  { %21 = vst.msk [vmem:[#allocation2] sm:$0xff] %vm20_vm0, %v19_v4 }
  0x7a   :  { %32 = dma.vmem_to_hbm [thread:$0]  %s28_s14, 128, %s30_s17, [#allocation3]  }
  0x7b   :  { %65 = dma.done.wait [#allocation3], 128  }
  0x7c   :  { %66 = vsyncadd [#allocation3], 4294967168 }
  0x7d   :  { %37 = vsyncpa [#allocation3], 1 }

</bundles_post_ra>
